<compile_context>
chip_gen: v5e
topology: v5e:2x2
jax: 0.10.0
libtpu: 0.0.40
codegen_flags: <defaults>
</compile_context>

<pallas_src>
import functools
import math

import jax
import jax.numpy as jnp
from jax.experimental import pallas as pl
from jax.experimental.pallas import tpu as pltpu


# ---------------------------------------------------------------------------
# Hardware queries (best-effort, conservative fallbacks)
# ---------------------------------------------------------------------------

def _vmem_capacity_bytes():
    try:
        return int(pltpu.get_tpu_info().vmem_capacity_bytes)
    except Exception:
        return 64 * 1024 * 1024  # conservative (v7x-sized VMEM)


def _supports_bf16_vpu():
    """v6e / v7x have bf16 VALUs; v5e (and older) do not."""
    try:
        kind = jax.devices()[0].device_kind.lower()
    except Exception:
        return False
    return not any(tag in kind for tag in ("v2", "v3", "v4", "v5"))


# ---------------------------------------------------------------------------
# Tiling helpers
# ---------------------------------------------------------------------------

def _divisors(n):
    ds = set()
    i = 1
    while i * i <= n:
        if n % i == 0:
            ds.add(i)
            ds.add(n // i)
        i += 1
    return sorted(ds)


def _choose_t_tile(T, multiple, max_rows):
    """Pick the T tile.

    Returns Tt such that either Tt == T (full extent: always a legal block) or
    Tt is a multiple of `multiple` (=> lane extent Tt*D % 128 == 0) and
    Tt <= max_rows.  When no divisor of T fits, a budget-capped aligned tile is
    returned and the grid uses pl.cdiv (ragged, masked last tile) instead of
    the old "one giant full-T block" fallback.
    """
    if T <= max_rows:
        return T
    aligned_cap = (max_rows // multiple) * multiple
    if aligned_cap < multiple:
        # Budget cannot fit even one lane-aligned tile: use the minimum legal
        # aligned tile (soft budget only), or full T if it is smaller.
        return min(multiple, T)
    divs = [d for d in _divisors(T) if d % multiple == 0 and d <= aligned_cap]
    if divs:
        return max(divs)          # exact tiling, no ragged tail
    return aligned_cap            # ragged tail via pl.cdiv grid


# ---------------------------------------------------------------------------
# Kernel
# ---------------------------------------------------------------------------

def _segmented_all_sum(stats, d, L, use_xlu_roll):
    """All-sum within each contiguous group of `d` lanes (last axis, length L).

    Requires L % d == 0.  Works for arbitrary d via a binary decomposition
    (<= ~2*log2(d) rotate + select + add steps on the tiny stats slab).
    """
    if d == 1:
        return stats
    lane_axis = stats.ndim - 1

    def roll_up(y, j):
        # result[..., i] = y[..., (i + j) % L],   0 < j < L
        if use_xlu_roll:
            # pltpu.roll == jnp.roll semantics: result[i] = y[(i - shift) % L].
            return pltpu.roll(y, shift=(L - j) % L, axis=lane_axis)
        return jnp.concatenate([y[..., j:], y[..., :j]], axis=lane_axis)

    seg = jax.lax.broadcasted_iota(jnp.int32, stats.shape, lane_axis) % d

    def within_roll(y, k):
        # Cyclic rotate by +k inside each d-lane segment (0 < k < d).
        fwd = roll_up(y, k)              # y[..., (i + k) % L]
        bwd = roll_up(y, (k - d) % L)    # y[..., (i + k - d) % L]
        return jnp.where(seg < d - k, fwd, bwd)

    # Binary decomposition of d: `window` holds sums over within-segment
    # offsets {0..w-1}; `result` accumulates the set bits of d.
    result = None
    result_w = 0
    window = stats
    w = 1
    rem = d
    while rem:
        if rem & 1:
            if result is None:
                result, result_w = window, w
            else:
                result = result + within_roll(window, result_w)
                result_w += w
        rem >>= 1
        if rem:
            window = window + within_roll(window, w)
            w *= 2
    return result


def _ln4d_lane_dense_kernel(x_ref, g_ref, b_ref, o_ref, *, eps, d, n_reduce,
                            low_precision_apply):
    """Block layout: x (1, C, L) with L = T_tile * D.

    Lane index j encodes (t, dd) = (j // d, j % d); statistics are reduced over
    C (sublane sum) and over each contiguous group of d lanes (segmented
    rotate-add tree), i.e. over the module's dims (1, 3) (or (1,) when d == 1).
    """
    x = x_ref[0]                                    # (C, L) native dtype
    L = x.shape[-1]
    xf = x.astype(jnp.float32)

    # One-pass statistics (f32): per-lane column sums over C, then an all-sum
    # within each contiguous group of d lanes on the tiny (2, L) slab.
    s1 = jnp.sum(xf, axis=0, keepdims=True)         # (1, L)  sum(x)
    s2 = jnp.sum(xf * xf, axis=0, keepdims=True)    # (1, L)  sum(x^2)
    stats = jnp.concatenate([s1, s2], axis=0)       # (2, L)
    stats = _segmented_all_sum(stats, d, L, use_xlu_roll=(L % 128 == 0))

    inv_n = 1.0 / n_reduce
    mu = stats[0:1] * inv_n                         # (1, L)
    var = jnp.maximum(stats[1:2] * inv_n - mu * mu, 0.0)
    inv_std = jax.lax.rsqrt(var + eps)              # EUP

    g = g_ref[...]                                  # (C, L), application dtype
    b = b_ref[...]
    if low_precision_apply:
        y = (x - mu.astype(x.dtype)) * inv_std.astype(x.dtype) * g + b
    else:
        y = (xf - mu) * inv_std * g + b
    o_ref[0] = y.astype(o_ref.dtype)


# ---------------------------------------------------------------------------
# Wrapper
# ---------------------------------------------------------------------------

def layer_norm_4d(x, gamma, beta, eps=1e-5, *, _max_lanes=None):
    """Pallas implementation of LayerNormalization4D.forward.

    x:     (B, C, T, D)
    gamma: (1, C, 1, D) float32
    beta:  (1, C, 1, D) float32
    """
    B, C, T, D = x.shape
    assert gamma.shape == (1, C, 1, D) and beta.shape == (1, C, 1, D)
    n_reduce = C * D  # dims (1, 3) when D > 1; equals C (dims (1,)) when D == 1

    # ---- generation-aware budgets -----------------------------------------
    phys_vmem = _vmem_capacity_bytes()
    vmem_limit = (64 * 1024 * 1024 if phys_vmem >= 128 * 1024 * 1024
                  else 40 * 1024 * 1024)

    x_item = jnp.dtype(x.dtype).itemsize
    low_prec_apply = (jnp.dtype(x.dtype) == jnp.dtype(jnp.bfloat16)
                      and _supports_bf16_vpu())
    app_dtype = x.dtype if low_prec_apply else jnp.float32
    g_item = jnp.dtype(app_dtype).itemsize

    def _pad_rows(item):
        # Sublane padding of a (C, Lt) block: 8 rows per tile for 32-bit,
        # 16 for 16-bit, 32 for 8-bit dtypes.
        sub = 8 * max(1, 4 // item)
        return ((C + sub - 1) // sub) * sub

    # VMEM per lane-column across pipeline buffers:
    #   2 x-in + 2 x-out (double-buffered) + 2 gamma + 2 beta.
    bytes_per_lane = 4 * _pad_rows(x_item) * x_item + 4 * _pad_rows(g_item) * g_item
    headroom = 8 * 1024 * 1024
    lanes_vmem_cap = max(128, (vmem_limit - headroom) // bytes_per_lane)
    # ~4 MiB x blocks hide the ~0.35 us per-grid-step overhead at v7x's
    # ~3.2 TB/s and are already past the roofline knee on v5e/v6e.
    lanes_roofline_cap = max(128, (4 * 1024 * 1024) // (_pad_rows(x_item) * x_item))
    max_lanes = min(lanes_vmem_cap, lanes_roofline_cap)
    if _max_lanes is not None:        # test hook: force small tiles / ragged grid
        max_lanes = _max_lanes

    lane_mult = 128 // math.gcd(D, 128)          # Tt multiple => Tt*D % 128 == 0
    Tt = _choose_t_tile(T, lane_mult, max(1, max_lanes // D))
    Lt = Tt * D
    nt = pl.cdiv(T, Tt)
    L = T * D

    x3 = x.reshape(B, C, L)
    # Pre-tile gamma/beta once to the (C, Lt) block layout in the application
    # dtype: tiled[c, t*D + dd] == gamma[0, c, 0, dd].
    g2 = jnp.tile(gamma.reshape(C, D).astype(app_dtype), (1, Tt))
    b2 = jnp.tile(beta.reshape(C, D).astype(app_dtype), (1, Tt))

    kernel = functools.partial(
        _ln4d_lane_dense_kernel, eps=eps, d=D, n_reduce=n_reduce,
        low_precision_apply=low_prec_apply)

    cost = pl.CostEstimate(
        flops=int(10 * B * C * T * D),
        transcendentals=int(B * T),
        bytes_accessed=int(2 * x.nbytes + g2.nbytes + b2.nbytes),
    )

    out3 = pl.pallas_call(
        kernel,
        out_shape=jax.ShapeDtypeStruct((B, C, L), x.dtype),
        grid=(B, nt),
        in_specs=[
            pl.BlockSpec((1, C, Lt), lambda b, t: (b, 0, t)),
            # Constant index_map: gamma/beta blocks are fetched once and stay
            # resident (pipeline skips re-copies when block indices repeat).
            pl.BlockSpec((C, Lt), lambda b, t: (0, 0)),
            pl.BlockSpec((C, Lt), lambda b, t: (0, 0)),
        ],
        out_specs=pl.BlockSpec((1, C, Lt), lambda b, t: (b, 0, t)),
        compiler_params=pltpu.CompilerParams(
            dimension_semantics=("parallel", "parallel"),
            vmem_limit_bytes=vmem_limit,
        ),
        cost_estimate=cost,
    )(x3, g2, b2)
    return out3.reshape(B, C, T, D)


# ---------------------------------------------------------------------------
# Reference + self-check
# ---------------------------------------------------------------------------

def _reference(x, gamma, beta, eps=1e-5):
    dims = (1, 3) if x.shape[-1] > 1 else (1,)
    mu = jnp.mean(x, axis=dims, keepdims=True)
    var = jnp.mean((x - mu) ** 2, axis=dims, keepdims=True)
    return (x - mu) / jnp.sqrt(var + eps) * gamma + beta


def _check(x, gamma, beta, eps=1e-5, max_lanes=None):
    out = jax.block_until_ready(
        layer_norm_4d(x, gamma, beta, eps=eps, _max_lanes=max_lanes))
    ref = _reference(x, gamma, beta, eps=eps)
    assert out.shape == x.shape and out.dtype == x.dtype
    assert jnp.allclose(out, ref, atol=1e-5, rtol=1e-5), "mismatch vs reference"


if __name__ == "__main__":
    key = jax.random.PRNGKey(0)
    kx, kg, kb = jax.random.split(key, 3)

    # Case 1: (C, D) = (4, 16) -> reduce over (1, 3); 128-lane-aligned block,
    # exercises the pltpu.roll segmented reduce.
    B, C, T, D = 2, 4, 8, 16
    x = jax.random.normal(kx, (B, C, T, D), dtype=jnp.float32)
    gamma = jax.random.normal(kg, (1, C, 1, D), dtype=jnp.float32)
    beta = jax.random.normal(kb, (1, C, 1, D), dtype=jnp.float32)
    _check(x, gamma, beta)

    # Case 2: D == 1 -> reduce over channel dim only (no lane reduce).
    x2 = jax.random.normal(kx, (2, 32, 16, 1), dtype=jnp.float32)
    g2 = jax.random.normal(kg, (1, 32, 1, 1), dtype=jnp.float32)
    b2 = jax.random.normal(kb, (1, 32, 1, 1), dtype=jnp.float32)
    _check(x2, g2, b2)

    # Case 3: non-power-of-two D -> generalized lane-dense path (L < 128,
    # concat-roll fallback inside the segmented reduce).
    x3 = jax.random.normal(kx, (2, 4, 8, 12), dtype=jnp.float32)
    g3 = jax.random.normal(kg, (1, 4, 1, 12), dtype=jnp.float32)
    b3 = jax.random.normal(kb, (1, 4, 1, 12), dtype=jnp.float32)
    _check(x3, g3, b3)

    # Case 4: forced small tile -> multi-step pipelined grid with a ragged
    # (masked) last T tile via pl.cdiv.
    x4 = jax.random.normal(kx, (2, 4, 36, 16), dtype=jnp.float32)
    g4 = jax.random.normal(kg, (1, 4, 1, 16), dtype=jnp.float32)
    b4 = jax.random.normal(kb, (1, 4, 1, 16), dtype=jnp.float32)
    _check(x4, g4, b4, max_lanes=128)

    print("KERNEL_OK")
</pallas_src>

<mosaic_0001>
module attributes {stable_mosaic.version = 11 : i64} {
  func.func @_ln4d_lane_dense_kernel(%arg0: i32, %arg1: i32, %arg2: memref<1x4x128xf32, #tpu.memory_space<vmem>>, %arg3: memref<4x128xf32, #tpu.memory_space<vmem>>, %arg4: memref<4x128xf32, #tpu.memory_space<vmem>>, %arg5: memref<1x4x128xf32, #tpu.memory_space<vmem>>) attributes {dimension_semantics = [#tpu.dimension_semantics<parallel>, #tpu.dimension_semantics<parallel>], iteration_bounds = array<i64: 2, 1>, scalar_prefetch = 0 : i64, scratch_operands = 0 : i64, tpu.core_type = #tpu.core_type<tc>, window_params = [{transform_indices = @transform_0, window_bounds = array<i64: 1, 4, 128>}, {pipeline_mode = #tpu.pipeline_mode<synchronous>, transform_indices = @transform_1, window_bounds = array<i64: 4, 128>}, {pipeline_mode = #tpu.pipeline_mode<synchronous>, transform_indices = @transform_2, window_bounds = array<i64: 4, 128>}, {transform_indices = @transform_3, window_bounds = array<i64: 1, 4, 128>}]} {
    %c0 = arith.constant 0 : index
    %c0_0 = arith.constant 0 : index
    %c0_1 = arith.constant 0 : index
    %0 = vector.load %arg2[%c0, %c0_0, %c0_1] : memref<1x4x128xf32, #tpu.memory_space<vmem>>, vector<1x4x128xf32>
    %1 = vector.shape_cast %0 : vector<1x4x128xf32> to vector<4x128xf32>
    %cst = arith.constant dense<0.000000e+00> : vector<128xf32>
    %2 = vector.multi_reduction <add>, %1, %cst [0] : vector<4x128xf32> to vector<128xf32>
    %3 = vector.shape_cast %2 : vector<128xf32> to vector<1x128xf32>
    %4 = arith.mulf %1, %1 : vector<4x128xf32>
    %cst_2 = arith.constant dense<0.000000e+00> : vector<128xf32>
    %5 = vector.multi_reduction <add>, %4, %cst_2 [0] : vector<4x128xf32> to vector<128xf32>
    %6 = vector.shape_cast %5 : vector<128xf32> to vector<1x128xf32>
    %7 = tpu.concatenate %3, %6 in 0 : vector<1x128xf32>, vector<1x128xf32> -> vector<2x128xf32>
    %8 = tpu.iota {dimensions = array<i32: 1>} : vector<2x128xi32>
    %c16_i32 = arith.constant 16 : i32
    %c0_i32 = arith.constant 0 : i32
    %9 = arith.cmpi eq, %c16_i32, %c0_i32 : i32
    %c1_i32 = arith.constant 1 : i32
    %10 = arith.select %9, %c1_i32, %c16_i32 : i32
    %11 = vector.broadcast %10 : i32 to vector<2x128xi32>
    %12 = arith.remsi %8, %11 : vector<2x128xi32>
    %c0_i32_3 = arith.constant 0 : i32
    %13 = vector.broadcast %c0_i32_3 : i32 to vector<2x128xi32>
    %14 = arith.cmpi ne, %12, %13 : vector<2x128xi32>
    %c0_i32_4 = arith.constant 0 : i32
    %15 = vector.broadcast %c0_i32_4 : i32 to vector<2x128xi32>
    %16 = arith.cmpi slt, %12, %15 : vector<2x128xi32>
    %c0_i32_5 = arith.constant 0 : i32
    %17 = arith.cmpi slt, %10, %c0_i32_5 : i32
    %18 = vector.broadcast %17 : i1 to vector<2x128xi1>
    %19 = vector.broadcast %18 : vector<2x128xi1> to vector<2x128xi1>
    %20 = arith.xori %16, %19 : vector<2x128xi1>
    %21 = arith.andi %20, %14 : vector<2x128xi1>
    %22 = vector.broadcast %10 : i32 to vector<2x128xi32>
    %23 = arith.addi %12, %22 : vector<2x128xi32>
    %24 = arith.select %21, %23, %12 : vector<2x128xi1>, vector<2x128xi32>
    %c127_i32 = arith.constant 127 : i32
    %25 = tpu.dynamic_rotate %7 by %c127_i32 dim 1 : vector<2x128xf32>, i32 -> vector<2x128xf32>
    %c15_i32 = arith.constant 15 : i32
    %26 = tpu.dynamic_rotate %7 by %c15_i32 dim 1 : vector<2x128xf32>, i32 -> vector<2x128xf32>
    %c15_i32_6 = arith.constant 15 : i32
    %27 = vector.broadcast %c15_i32_6 : i32 to vector<2x128xi32>
    %28 = arith.cmpi slt, %24, %27 : vector<2x128xi32>
    %29 = arith.select %28, %25, %26 : vector<2x128xi1>, vector<2x128xf32>
    %30 = arith.addf %7, %29 : vector<2x128xf32>
    %c126_i32 = arith.constant 126 : i32
    %31 = tpu.dynamic_rotate %30 by %c126_i32 dim 1 : vector<2x128xf32>, i32 -> vector<2x128xf32>
    %c14_i32 = arith.constant 14 : i32
    %32 = tpu.dynamic_rotate %30 by %c14_i32 dim 1 : vector<2x128xf32>, i32 -> vector<2x128xf32>
    %c14_i32_7 = arith.constant 14 : i32
    %33 = vector.broadcast %c14_i32_7 : i32 to vector<2x128xi32>
    %34 = arith.cmpi slt, %24, %33 : vector<2x128xi32>
    %35 = arith.select %34, %31, %32 : vector<2x128xi1>, vector<2x128xf32>
    %36 = arith.addf %30, %35 : vector<2x128xf32>
    %c124_i32 = arith.constant 124 : i32
    %37 = tpu.dynamic_rotate %36 by %c124_i32 dim 1 : vector<2x128xf32>, i32 -> vector<2x128xf32>
    %c12_i32 = arith.constant 12 : i32
    %38 = tpu.dynamic_rotate %36 by %c12_i32 dim 1 : vector<2x128xf32>, i32 -> vector<2x128xf32>
    %c12_i32_8 = arith.constant 12 : i32
    %39 = vector.broadcast %c12_i32_8 : i32 to vector<2x128xi32>
    %40 = arith.cmpi slt, %24, %39 : vector<2x128xi32>
    %41 = arith.select %40, %37, %38 : vector<2x128xi1>, vector<2x128xf32>
    %42 = arith.addf %36, %41 : vector<2x128xf32>
    %c120_i32 = arith.constant 120 : i32
    %43 = tpu.dynamic_rotate %42 by %c120_i32 dim 1 : vector<2x128xf32>, i32 -> vector<2x128xf32>
    %c8_i32 = arith.constant 8 : i32
    %44 = tpu.dynamic_rotate %42 by %c8_i32 dim 1 : vector<2x128xf32>, i32 -> vector<2x128xf32>
    %c8_i32_9 = arith.constant 8 : i32
    %45 = vector.broadcast %c8_i32_9 : i32 to vector<2x128xi32>
    %46 = arith.cmpi slt, %24, %45 : vector<2x128xi32>
    %47 = arith.select %46, %43, %44 : vector<2x128xi1>, vector<2x128xf32>
    %48 = arith.addf %42, %47 : vector<2x128xf32>
    %49 = vector.extract_strided_slice %48 {offsets = [0, 0], sizes = [1, 128], strides = [1, 1]} : vector<2x128xf32> to vector<1x128xf32>
    %cst_10 = arith.constant 1.562500e-02 : f32
    %50 = vector.broadcast %cst_10 : f32 to vector<1x128xf32>
    %51 = arith.mulf %49, %50 : vector<1x128xf32>
    %52 = vector.extract_strided_slice %48 {offsets = [1, 0], sizes = [1, 128], strides = [1, 1]} : vector<2x128xf32> to vector<1x128xf32>
    %cst_11 = arith.constant 1.562500e-02 : f32
    %53 = vector.broadcast %cst_11 : f32 to vector<1x128xf32>
    %54 = arith.mulf %52, %53 : vector<1x128xf32>
    %55 = arith.mulf %51, %51 : vector<1x128xf32>
    %56 = arith.subf %54, %55 : vector<1x128xf32>
    %cst_12 = arith.constant 0.000000e+00 : f32
    %57 = vector.broadcast %cst_12 : f32 to vector<1x128xf32>
    %58 = arith.maximumf %56, %57 : vector<1x128xf32>
    %cst_13 = arith.constant 9.99999974E-6 : f32
    %59 = vector.broadcast %cst_13 : f32 to vector<1x128xf32>
    %60 = arith.addf %58, %59 : vector<1x128xf32>
    %61 = math.rsqrt %60 : vector<1x128xf32>
    %c0_14 = arith.constant 0 : index
    %c0_15 = arith.constant 0 : index
    %62 = vector.load %arg3[%c0_14, %c0_15] : memref<4x128xf32, #tpu.memory_space<vmem>>, vector<4x128xf32>
    %c0_16 = arith.constant 0 : index
    %c0_17 = arith.constant 0 : index
    %63 = vector.load %arg4[%c0_16, %c0_17] : memref<4x128xf32, #tpu.memory_space<vmem>>, vector<4x128xf32>
    %64 = vector.broadcast %51 : vector<1x128xf32> to vector<4x128xf32>
    %65 = arith.subf %1, %64 : vector<4x128xf32>
    %66 = vector.broadcast %61 : vector<1x128xf32> to vector<4x128xf32>
    %67 = arith.mulf %65, %66 : vector<4x128xf32>
    %68 = arith.mulf %67, %62 : vector<4x128xf32>
    %69 = arith.addf %68, %63 : vector<4x128xf32>
    %c0_18 = arith.constant 0 : index
    %c0_19 = arith.constant 0 : index
    %c0_20 = arith.constant 0 : index
    %70 = vector.load %arg5[%c0_18, %c0_19, %c0_20] : memref<1x4x128xf32, #tpu.memory_space<vmem>>, vector<1x4x128xf32>
    %71 = vector.shape_cast %70 : vector<1x4x128xf32> to vector<4x128xf32>
    %72 = vector.shape_cast %69 : vector<4x128xf32> to vector<1x4x128xf32>
    tpu.vector_store %arg5[%c0_18, %c0_19, %c0_20], %72 {strides = array<i32>} : memref<1x4x128xf32, #tpu.memory_space<vmem>>, vector<1x4x128xf32>,
    return
  }
  func.func @transform_0(%arg0: i32, %arg1: i32) -> (i32, i32, i32) {
    %c0_i32 = arith.constant 0 : i32
    %c0_i32_0 = arith.constant 0 : i32
    return %arg0, %c0_i32, %arg1 : i32, i32, i32
  }
  func.func @transform_1(%arg0: i32, %arg1: i32) -> (i32, i32) {
    %c0_i32 = arith.constant 0 : i32
    %c0_i32_0 = arith.constant 0 : i32
    %c0_i32_1 = arith.constant 0 : i32
    return %c0_i32, %c0_i32_0 : i32, i32
  }
  func.func @transform_2(%arg0: i32, %arg1: i32) -> (i32, i32) {
    %c0_i32 = arith.constant 0 : i32
    %c0_i32_0 = arith.constant 0 : i32
    %c0_i32_1 = arith.constant 0 : i32
    return %c0_i32, %c0_i32_0 : i32, i32
  }
  func.func @transform_3(%arg0: i32, %arg1: i32) -> (i32, i32, i32) {
    %c0_i32 = arith.constant 0 : i32
    %c0_i32_0 = arith.constant 0 : i32
    return %arg0, %c0_i32, %arg1 : i32, i32, i32
  }
}

</mosaic_0001>

<bundles_post_ra>
// kernel: tpu_custom_call.1
= control target key start
LH: loop header
LB: loop body
LE: loop exit
PB: predicated region body
PF: predicated region fallthrough
CT: control target
= control target key end

     0   :  { %8 = vsyncpa [#allocation3], 0  ;;  %s908_s0 = inlined_call_operand.hbm [shape: f32[2,4,128], index: 0, kind: input, shape index: {}]   ;;  %s909_s1 = inlined_call_operand.hbm [shape: f32[4,128], index: 1, kind: input, shape index: {}]   ;;  %s910_s2 = inlined_call_operand.hbm [shape: f32[4,128], index: 2, kind: input, shape index: {}]   ;;  %s911_s3 = inlined_call_operand.hbm [shape: f32[2,4,128], index: 3, kind: output, shape index: {}]  }
   0x1   :  { %10 = vsyncpa [#allocation3 + $0x1], 0 }
   0x2   :  { %11 = vsyncpa [#allocation6], 0 }
   0x3   :  { %12 = vsyncpa [#allocation4], 0 }
   0x4   :  { %14 = vsyncpa [#allocation4 + $0x1], 0  ;;  %s756_s12 = smov 0   ;;  %s758_s13 = smov 0  }
   0x5   :  { %s760_s14 = smov 0   ;;  %s762_s15 = smov 0  }
   0x6   :  { %s764_s16 = smov 0   ;;  %s766_s17 = smov 0  }
   0x7 LB: > { %s438_s18 = sadd.s32 4294967295, %s724_s17   ;;  %s439_s19 = sadd.s32 4294967294, %s724_s17   ;;  %s724_s17 = sphi %s766_s17, %s20_s17   ;;  %s720_s16 = sphi %s764_s16, %s921_s16   ;;  %s716_s15 = sphi %s762_s15, %s920_s15   ;;  %s712_s14 = sphi %s760_s14, %s919_s14   ;;  %s708_s13 = sphi %s758_s13, %s918_s13   ;;  %s704_s12 = sphi %s756_s12, %s917_s12  }
   0x8   : > { %p54_p0 = scmp.ne.s32.totalorder %s708_s13, %s704_s12  ;;  %p790_p1 = scmp.eq.s32.totalorder %s438_s18, 0 }
   0x9   : > { %p128_p2 = scmp.eq.s32.totalorder %s439_s19, 1  ;;  %p440_p4 = scmp.ge.s32.totalorder %s724_s17, 1 }
   0xa   : > { %p796_p3 = por %p790_p1, %p54_p0  ;;  %p135_p6 = scmp.lt.s32.totalorder %s724_s17, 3 }
   0xb   : > { %p801_p5 = por %p128_p2, %p54_p0  ;;  %s147_s25 = sshll.u32 %s909_s1, 4  ;;  %s148_s25 = int_to_ptr.hbm [resolvable:$true] %s147_s25 }
   0xc   : > { %p809_p7 = pnand %p440_p4, %p135_p6  ;;  %p443_p8 = scmp.ge.s32.totalorder %s724_s17, 2 }
   0xd   : > { %s726_s27 = smov [#allocation5]   ;;  %s159_s4 = sshll.u32 %s910_s2, 4  ;;  %s160_s4 = int_to_ptr.hbm [resolvable:$true] %s159_s4 }
   0xe   : > { %p467_p9 = pneg %p809_p7  ;;  %s149_s28 = sshll.u32 %s726_s27, 4  ;;  %s150_s28 = int_to_ptr.vmem [resolvable:$true] %s149_s28 }
   0xf   : > { %s727_s5 = smov [#allocation7]   ;;  %p122_p11 = scmp.eq.s32.totalorder %s438_s18, 1 }
  0x10   : > { %p468_p10 = pnand %p467_p9, %p790_p1  ;;  %s161_s6 = sshll.u32 %s727_s5, 4  ;;  %s162_s6 = int_to_ptr.vmem [resolvable:$true] %s161_s6 }
  0x11   : > { %s32_s7 = sadd.s32 1, %s720_s16  ;;  %s41_s8 = sadd.s32 1, %s712_s14 }
  0x12   : > { %470 = dma.hbm_to_vmem [thread:$0]  (!%p468_p10), %s148_s25, 64, %s150_s28, [#allocation6]  }
  0x13   : > { %473 = dma.hbm_to_vmem [thread:$0]  (!%p468_p10), %s160_s4, 64, %s162_s6, [#allocation6]  }
  0x14   : > { %p34_p12 = scmp.ge.s32.totalorder %s32_s7, 2  ;;  %p48_p13 = scmp.ne.s32.totalorder %s712_s14, %s708_s13 }
  0x15   : > { %p49_p0 = scmp.eq.s32.totalorder %s724_s17, 0  ;;  %p484_p4 = scmp.lt.s32.totalorder %s724_s17, 2 }
  0x16   : > { %s923_s7 = smov (%p34_p12, %s32_s7), 0  ;;  %p828_p2 = por %p122_p11, %p48_p13 }
  0x17   : > { %s36_s10 = ssub.s32 %s720_s16, %s923_s7  ;;  %s172_s11 = sand.u32 1, %s712_s14  }
  0x18   : > { %p39_p6 = scmp.eq.s32.totalorder %s36_s10, 0  ;;  %p50_p9 = por %p49_p0, %p48_p13 }
  0x19   : > { %s444_s19 = sshll.u32 %s172_s11, 2  ;;  %s445_s18 = sshll.u32 %s720_s16, 2 }
  0x1a   : > { %s838_s23 = scalar_select %p39_p6, %s712_s14, %s41_s8  }
  0x1b   : > { %s181_s27 = scalar_lea.hbm %s908_s0, %s445_s18  ;;  %s176_s29 = scalar_lea.vmem [#allocation2], %s444_s19 }
  0x1c   : > { %s183_s28 = sshll.u32 %s181_s27, 4  ;;  %s185_s30 = sshll.u32 %s176_s29, 4  ;;  %s184_s28 = int_to_ptr.hbm [resolvable:$true] %s183_s28  ;;  %s186_s30 = int_to_ptr.vmem [resolvable:$true] %s185_s30 }
  0x1d   : > { %p475_p10 = pnand %p484_p4, %p50_p9  ;;  %s173_s4 = scalar_lea.sflag [#allocation3], %s172_s11 }
  0x1e   : > { %194 = sbr.rel (%p809_p7) target bundleno = 568 (0x238), region = 32  ;;  %s848_s5 = sand.u32 (!%p809_p7), 1, %s708_s13  }
  0x1f   : > { %477 = dma.hbm_to_vmem [thread:$0]  (!%p475_p10), %s184_s28, 64, %s186_s30, %s173_s4  }
  0x20   : > { %s447_s6 = sshll.u32 (!%p809_p7), %s848_s5, 2  ;;  %s197_s8 = scalar_lea.sflag (!%p809_p7), [#allocation3], %s848_s5 }
  0x21   : > { %s200_s10 = scalar_lea.vmem (!%p809_p7), [#allocation2], %s447_s6 }
  0x23   : > { %691 = dma.done.wait (%p796_p3), %s197_s8, 64  }
  0x24   : > { %693 = vsyncadd (%p796_p3), %s197_s8, 4294967232 }
  0x25   : > { %695 = dma.done.wait (%p790_p1), [#allocation6], 128  }
  0x26   : > { %697 = vsyncadd (%p790_p1), [#allocation6], 4294967168  ;;  %vm235_vm0 = vcmask 1043456   ;;  %v862_v0 = vld [vmem:[%s200_s10] sm:$0xf]  ;;  %vm251_vm1 = vcmask 1040384   ;;  %v253_v17 = vlaneseq }
  0x27   : > { %v236_v1 = vsel %vm235_vm0, %v862_v0, 0.0  ;;  %v243_v2 = vmul.f32 %v862_v0, %v862_v0  ;;  %s728_s20 = smov 127   ;;  %s729_s21 = smov 15   ;;  %v313_v52 = vld [vmem:[#allocation5] sm:$0xf] }
  0x28   : > { %v237_v3 = vrot.slane %v236_v1, 4  ;;  %v254_v18 = vand.u32 127, %v253_v17  ;;  %s730_s26 = smov 126   ;;  %s731_s11 = smov 14   ;;  %v314_v54 = vld [vmem:[#allocation7] sm:$0xf] }
  0x29   : > { %v244_v4 = vsel %vm235_vm0, %v243_v2, 0.0  ;;  %s732_s19 = smov 124   ;;  %s733_s18 = smov 12  }
  0x2a   : > { %v238_v5 = vadd.f32 %v237_v3, %v236_v1  ;;  %v245_v6 = vrot.slane %v244_v4, 4  ;;  %v259_v20 = vand.u32 15, %v254_v18  ;;  %s734_s24 = smov 8   ;;  %s735_s25 = smov 120  }
  0x2b   : > { %s452_s27 = sshll.u32 %s716_s15, 2  ;;  %s233_s4 = scalar_lea.vmem [#allocation8], %s447_s6 }
  0x2c   : > { %v239_v7 = vrot.slane %v238_v5, 2  ;;  %v246_v8 = vadd.f32 %v245_v6, %v244_v4  ;;  %vm271_vm2 = vcmp.lt.s32.totalorder %v259_v20, 15  ;;  %vm278_vm3 = vcmp.lt.s32.totalorder %v259_v20, 14  ;;  %s334_s30 = scalar_lea.hbm %s911_s3, %s452_s27  ;;  %s336_s8 = sshll.u32 %s233_s4, 4  ;;  %s337_s8 = int_to_ptr.vmem [resolvable:$true] %s336_s8 }
  0x2d   : > { %vm285_vm4 = vcmp.lt.s32.totalorder %v259_v20, 12  ;;  %vm292_vm5 = vcmp.lt.s32.totalorder %v259_v20, 8  ;;  %s338_s10 = sshll.u32 %s334_s30, 4  ;;  %s323_s15 = scalar_lea.sflag [#allocation4], %s848_s5  ;;  %s339_s10 = int_to_ptr.hbm [resolvable:$true] %s338_s10 }
  0x2e   : > { %v240_v9 = vadd.f32 %v239_v7, %v238_v5  ;;  %v247_v10 = vrot.slane %v246_v8, 2 }
  0x30   : > { %v241_v11 = vrot.slane %v240_v9, 1  ;;  %v248_v12 = vadd.f32 %v247_v10, %v246_v8 }
  0x32   : > { %v242_v13 = vadd.f32 %v241_v11, %v240_v9  ;;  %v249_v14 = vrot.slane %v248_v12, 1 }
  0x34   : > { %v250_v15 = vadd.f32 %v249_v14, %v248_v12 }
  0x36   : > { %v252_v16 = vsel %vm251_vm1, %v242_v13, %v250_v15 }
  0x37   : > { %267 = vrot.lane.b32.xlu0 %v252_v16, %s728_s20  ;;  %s652_s20 = sshra.s32 %s339_s10, 4  ;;  %s653_s20 = int_to_ptr.hbm [resolvable:$true] %s652_s20 }
  0x38   : > { %p659_p11 = scmp.lt.s32.totalorder %s653_s20, %s911_s3 }
  0x3f   : > { %269 = vrot.lane.b32.xlu0 %v252_v16, %s729_s21  ;;  %s654_s21 = scalar_lea.hbm %s653_s20, 4 }
  0x40   : > { %p655_p1 = scmp.ne.s32.totalorder %s653_s20, %s654_s21 }
  0x42   : > { %p656_p3 = pnand %p655_p1, %p828_p2 }
  0x44   : > { %p657_p7 = pneg %p656_p3 }
  0xa9   : > { %v268_v19 = vpop.permute.xlu0 %267 }
  0xb1   : > { %v270_v21 = vpop.permute.xlu0 %269 }
  0xb2   : > { %v272_v22 = vsel %vm271_vm2, %v268_v19, %v270_v21 }
  0xb3   : > { %v273_v23 = vadd.f32 %v272_v22, %v252_v16 }
  0xb5   : > { %274 = vrot.lane.b32.xlu1 %v273_v23, %s730_s26 }
  0xbd   : > { %276 = vrot.lane.b32.xlu1 %v273_v23, %s731_s11 }
 0x127   : > { %v275_v24 = vpop.permute.xlu1 %274 }
 0x12f   : > { %v277_v25 = vpop.permute.xlu1 %276 }
 0x130   : > { %v279_v26 = vsel %vm278_vm3, %v275_v24, %v277_v25 }
 0x131   : > { %v280_v27 = vadd.f32 %v279_v26, %v273_v23 }
 0x133   : > { %281 = vrot.lane.b32.xlu2 %v280_v27, %s732_s19  ;;  %s658_s19 = scalar_lea.hbm %s911_s3, 8 }
 0x134   : > { %p660_p12 = scmp.lt.s32.totalorder %s658_s19, %s654_s21 }
 0x136   : > { %p661_p13 = por %p660_p12, %p659_p11 }
 0x138   : > { %p662_p0 = pnand %p661_p13, %p657_p7 }
 0x13b   : > { %283 = vrot.lane.b32.xlu2 %v280_v27, %s733_s18 }
 0x18d   : > { %v282_v28 = vpop.permute.xlu2 %281 }
 0x195   : > { %v284_v29 = vpop.permute.xlu2 %283 }
 0x196   : > { %v286_v30 = vsel %vm285_vm4, %v282_v28, %v284_v29 }
 0x197   : > { %v287_v31 = vadd.f32 %v286_v30, %v280_v27 }
 0x199   : > { %290 = vrot.lane.b32.xlu1 %v287_v31, %s734_s24  ;;  %288 = vrot.lane.b32.xlu0 %v287_v31, %s735_s25 }
 0x20b   : > { %v291_v32 = vpop.permute.xlu1 %290  ;;  %v289_v33 = vpop.permute.xlu0 %288 }
 0x20c   : > { %v293_v34 = vsel %vm292_vm5, %v289_v33, %v291_v32 }
 0x20d   : > { %v294_v35 = vadd.f32 %v293_v34, %v287_v31 }
 0x20f   : > { %v295_v36 = vmul.f32 0.015625, %v294_v35 }
 0x211   : > { %v296_v37 = vmul.f32 %v295_v36, %v295_v36  ;;  %v315_v47 = vperm.slane %v295_v36, 0 }
 0x213   : > { %v298_v38 = vrot.slane %v296_v37, 7  ;;  %v316_v50 = vsub.f32 %v862_v0, %v315_v47 }
 0x215   : > { %v300_v39 = vsub.f32 %v295_v36, %v298_v38 }
 0x217   : > { %v301_v40 = vmax.f32 %v300_v39, 0.0 }
 0x219   : > { %v302_v41 = vadd.f32 1e-05, %v301_v40 }
 0x21b   : > { %546 = vrsqrt.f32 %v302_v41  ;;  %vm309_vm7 = vweird.f32 %v302_v41 }
 0x221   : > { %v547_v42 = vpop.eup %546 }
 0x222   : > { %v304_v43 = vmul.f32 %v547_v42, %v302_v41  ;;  %vm310_vm6 = vweird.f32 %v547_v42 }
 0x223   : > { %vm311_vm8 = vmor %vm309_vm7, %vm310_vm6 }
 0x224   : > { %v305_v44 = vmul.f32 %v547_v42, %v304_v43 }
 0x226   : > { %v306_v45 = vmul.f32 0.5, %v305_v44 }
 0x228   : > { %v307_v46 = vsub.f32 1.5, %v306_v45 }
 0x22a   : > { %v308_v48 = vmul.f32 %v547_v42, %v307_v46 }
 0x22c   : > { %v312_v49 = vsel %vm311_vm8, %v547_v42, %v308_v48 }
 0x22d   : > { %v317_v51 = vperm.slane %v312_v49, 1 }
 0x22f   : > { %v318_v53 = vmul.f32 %v317_v51, %v316_v50 }
 0x231   : > { %v319_v55 = vmul.f32 %v318_v53, %v313_v52 }
 0x233   : > { %v320_v56 = vadd.f32 %v319_v55, %v314_v54 }
 0x235   : > { %321 = vst [vmem:[%s233_s4] sm:$0xf] %v320_v56 }
 0x236   : > { %665 = shalt.err (!%p662_p0)
}
 0x237   : > { %465 = dma.vmem_to_hbm [thread:$0]  (%p828_p2), %s337_s8, 64, %s339_s10, %s323_s15  }
 0x238 PF: > { %s350_s5 = sand.u32 1, %s704_s12   ;;  %p479_p4 = pnand %p443_p8, %p801_p5 }
 0x239   : > { %s351_s24 = scalar_lea.sflag [#allocation4], %s350_s5 }
 0x23a   : > { %p480_p6 = pneg %p479_p4 }
 0x23c   : > { %699 = dma.done.wait (%p480_p6), %s351_s24, 64  }
 0x23d   : > { %701 = vsyncadd (%p480_p6), %s351_s24, 4294967232  ;;  %s20_s17 = sadd.s32 1, %s724_s17   ;;  %s917_s12 = smov %s708_s13 }
 0x23e   : > { %p17_p9 = scmp.ge.s32.totalorder %s20_s17, 4   ;;  %s918_s13 = smov %s712_s14 }
 0x23f   : > { %s919_s14 = smov %s838_s23  ;;  %s920_s15 = smov %s720_s16 }
 0x240   : > { %s921_s16 = smov %s923_s7  ;;  %19 = sbr.rel (!%p17_p9) target bundleno = 7 (0x7), region = 85 }
 0x245   :  { %357 = vsyncpa [#allocation3], 1 }
 0x246   :  { %359 = vsyncpa [#allocation3 + $0x1], 1 }
 0x247   :  { %360 = vsyncpa [#allocation6], 1 }
 0x248   :  { %361 = vsyncpa [#allocation4], 1 }
 0x249   :  { %363 = vsyncpa [#allocation4 + $0x1], 1 }

</bundles_post_ra>
